<compile_context>
chip_gen: v7x
topology: tpu7x:2x2x1
jax: 0.10.0
libtpu: 0.0.40
codegen_flags: <defaults>
</compile_context>

<pallas_src>
import functools

import jax
import jax.numpy as jnp
from jax import lax
from jax.experimental import pallas as pl
from jax.experimental.pallas import tpu as pltpu


def _round_up(x: int, m: int) -> int:
    return ((x + m - 1) // m) * m


def _pick_tile_rows(sz: int, vocab: int, itemsize: int,
                    vmem_budget_bytes: int = 16 * 1024 * 1024) -> int:
    """Largest row tile whose double-buffered (rows, V) logits block fits the budget."""
    rows = (vmem_budget_bytes // 2) // max(1, vocab * itemsize)
    rows = max(32, min(int(rows), 1024))
    rows = (rows // 32) * 32                 # multiple of 32: safe sublane tiling for any dtype
    rows = min(rows, _round_up(sz, 32))      # never exceed (padded) problem size
    return max(rows, 32)


def _vae_loss_kernel(logits_ref, tgt_ref, mu_ref, std_ref, out_ref,
                     ce_sum_ref, cnt_ref, kld_ref, *,
                     pad_idx: int, beta: float, sz: int):
    i = pl.program_id(0)

    # ---- init accumulators + KLD term (runs exactly once, on the first tile) ----
    @pl.when(i == 0)
    def _():
        ce_sum_ref[...] = jnp.zeros_like(ce_sum_ref)
        cnt_ref[...] = jnp.zeros_like(cnt_ref)
        mu = mu_ref[...].astype(jnp.float32)
        std = std_ref[...].astype(jnp.float32)
        # -0.5 * sum(1 + 2*log(|mu|) - mu^2 - std^2)   (matches the PyTorch module)
        kld_ref[...] = -0.5 * jnp.sum(
            1.0 + 2.0 * jnp.log(jnp.abs(mu)) - mu * mu - std * std,
            keepdims=True)

    # ---- per-tile cross entropy with ignore_index --------------------------------
    logits = logits_ref[...].astype(jnp.float32)    # stream native dtype, compute f32
    tgt = tgt_ref[...]                              # (TILE, 1) int32

    row_max = jnp.max(logits, axis=-1, keepdims=True)                    # (TILE, 1)
    lse = row_max + jnp.log(
        jnp.sum(jnp.exp(logits - row_max), axis=-1, keepdims=True))      # (TILE, 1)

    col = lax.broadcasted_iota(jnp.int32, logits.shape, 1)               # (TILE, V)
    tgt_logit = jnp.sum(jnp.where(col == tgt, logits, 0.0),
                        axis=-1, keepdims=True)                          # (TILE, 1)

    valid = tgt != pad_idx                                               # (TILE, 1)
    per_tok = jnp.where(valid, lse - tgt_logit, 0.0)

    ce_sum_ref[...] = ce_sum_ref[...] + jnp.sum(per_tok, keepdims=True)
    cnt_ref[...] = cnt_ref[...] + jnp.sum(valid.astype(jnp.float32), keepdims=True)

    # ---- finalize (runs exactly once, on the last tile) --------------------------
    @pl.when(i == pl.num_programs(0) - 1)
    def _():
        n_valid = jnp.maximum(cnt_ref[...], 1.0)     # guard 0/0 when every token is pad
        rec_loss = ce_sum_ref[...] / n_valid
        out_ref[...] = kld_ref[...] * jnp.float32(float(beta) / float(sz)) + rec_loss


def vae_loss(pred, output, latent_mu, latent_std, *, beta: float, pad_idx: int,
             tile_rows: int | None = None):
    """pred: (B, S, V) float (any dtype), output: (B, S) int, latent_*: (B, L) float."""
    B, S, V = pred.shape
    sz = B * S

    logits = pred.reshape(sz, V)                          # keep native dtype (bandwidth)
    targets = output.reshape(sz, 1).astype(jnp.int32)

    itemsize = jnp.dtype(logits.dtype).itemsize
    tile = tile_rows if tile_rows is not None else _pick_tile_rows(sz, V, itemsize)
    sz_padded = _round_up(sz, tile)
    if sz_padded != sz:
        # Pad rows: padded targets get pad_idx so they are masked like ignored tokens.
        logits = jnp.pad(logits, ((0, sz_padded - sz), (0, 0)))
        targets = jnp.pad(targets, ((0, sz_padded - sz), (0, 0)),
                          constant_values=pad_idx)
    num_tiles = sz_padded // tile

    kernel = functools.partial(_vae_loss_kernel,
                               pad_idx=int(pad_idx), beta=float(beta), sz=sz)

    out = pl.pallas_call(
        kernel,
        out_shape=jax.ShapeDtypeStruct((1, 1), jnp.float32),
        grid_spec=pltpu.PrefetchScalarGridSpec(
            num_scalar_prefetch=0,
            grid=(num_tiles,),
            in_specs=[
                pl.BlockSpec((tile, V), lambda i: (i, 0)),          # logits row tile
                pl.BlockSpec((tile, 1), lambda i: (i, 0)),          # targets row tile
                pl.BlockSpec(latent_mu.shape, lambda i: (0, 0)),    # tiny, resident
                pl.BlockSpec(latent_std.shape, lambda i: (0, 0)),   # tiny, resident
            ],
            out_specs=pl.BlockSpec((1, 1), lambda i: (0, 0)),       # resident scalar out
            scratch_shapes=[
                pltpu.VMEM((1, 1), jnp.float32),   # running CE sum
                pltpu.VMEM((1, 1), jnp.float32),   # running valid-token count
                pltpu.VMEM((1, 1), jnp.float32),   # KLD (computed once)
            ],
        ),
        compiler_params=pltpu.CompilerParams(
            dimension_semantics=("arbitrary",)),   # row axis carries the accumulator
    )(logits, targets, latent_mu, latent_std)
    return out[0, 0]


def _reference_loss(pred, output, latent_mu, latent_std, *, beta, pad_idx):
    B, S, V = pred.shape
    sz = B * S
    mu = latent_mu.astype(jnp.float32)
    std = latent_std.astype(jnp.float32)
    kld = -0.5 * jnp.sum(1.0 + 2.0 * jnp.log(jnp.abs(mu)) - mu ** 2 - std ** 2)
    logits = pred.reshape(sz, V).astype(jnp.float32)
    tgt = output.reshape(sz)
    lse = jax.nn.logsumexp(logits, axis=-1)
    tgt_logit = jnp.take_along_axis(logits, tgt[:, None], axis=-1)[:, 0]
    valid = tgt != pad_idx
    rec = jnp.sum(jnp.where(valid, lse - tgt_logit, 0.0)) / jnp.sum(valid)
    return kld / sz * beta + rec


if __name__ == "__main__":
    key = jax.random.PRNGKey(0)
    k_pred, k_out, k_mu, k_std, k_pred2, k_out2 = jax.random.split(key, 6)

    PAD_IDX = 0
    BETA = 2.0

    # ---- test 1: small f32 shapes, single tile --------------------------------
    B, S, V, L = 2, 8, 32, 16
    pred = jax.random.normal(k_pred, (B, S, V), dtype=jnp.float32)
    output = jax.random.randint(k_out, (B, S), 0, V, dtype=jnp.int32)
    latent_mu = jax.random.normal(k_mu, (B, L), dtype=jnp.float32)
    latent_std = jax.random.normal(k_std, (B, L), dtype=jnp.float32) * 0.5 + 1.0

    loss = vae_loss(pred, output, latent_mu, latent_std, beta=BETA, pad_idx=PAD_IDX)
    jax.block_until_ready(loss)
    ref = _reference_loss(pred, output, latent_mu, latent_std, beta=BETA, pad_idx=PAD_IDX)
    assert jnp.allclose(loss, ref, rtol=1e-5, atol=1e-5), (loss, ref)

    # ---- test 2: bf16 logits, multiple row tiles + row padding ----------------
    B2, S2, V2 = 2, 100, 128           # sz = 200 -> padded to 256 with tile_rows=64
    pred2 = jax.random.normal(k_pred2, (B2, S2, V2), dtype=jnp.bfloat16)
    output2 = jax.random.randint(k_out2, (B2, S2), 0, V2, dtype=jnp.int32)

    loss2 = vae_loss(pred2, output2, latent_mu, latent_std,
                     beta=BETA, pad_idx=PAD_IDX, tile_rows=64)
    jax.block_until_ready(loss2)
    ref2 = _reference_loss(pred2, output2, latent_mu, latent_std,
                           beta=BETA, pad_idx=PAD_IDX)
    assert jnp.allclose(loss2, ref2, rtol=1e-4, atol=1e-4), (loss2, ref2)

    print("KERNEL_OK")
</pallas_src>

<mosaic_0001>
module attributes {stable_mosaic.version = 11 : i64} {
  func.func @_vae_loss_kernel(%arg0: i32, %arg1: memref<32x32xf32, #tpu.memory_space<vmem>>, %arg2: memref<32x1xi32, #tpu.memory_space<vmem>>, %arg3: memref<2x16xf32, #tpu.memory_space<vmem>>, %arg4: memref<2x16xf32, #tpu.memory_space<vmem>>, %arg5: memref<1x1xf32, #tpu.memory_space<vmem>>, %arg6: memref<1x1xf32, #tpu.memory_space<vmem>>, %arg7: memref<1x1xf32, #tpu.memory_space<vmem>>, %arg8: memref<1x1xf32, #tpu.memory_space<vmem>>) attributes {dimension_semantics = [#tpu.dimension_semantics<arbitrary>], iteration_bounds = array<i64: 1>, scalar_prefetch = 0 : i64, scratch_operands = 3 : i64, tpu.core_type = #tpu.core_type<tc>, window_params = [{transform_indices = @transform_0, window_bounds = array<i64: 32, 32>}, {transform_indices = @transform_1, window_bounds = array<i64: 32, 1>}, {pipeline_mode = #tpu.pipeline_mode<synchronous>, transform_indices = @transform_2, window_bounds = array<i64: 2, 16>}, {pipeline_mode = #tpu.pipeline_mode<synchronous>, transform_indices = @transform_3, window_bounds = array<i64: 2, 16>}, {pipeline_mode = #tpu.pipeline_mode<synchronous>, transform_indices = @transform_4, window_bounds = array<i64: 1, 1>}]} {
    %c0_i32 = arith.constant 0 : i32
    %0 = arith.cmpi eq, %arg0, %c0_i32 : i32
    %1 = arith.extui %0 : i1 to i32
    %c0_i32_0 = arith.constant 0 : i32
    %2 = arith.cmpi ne, %1, %c0_i32_0 : i32
    scf.if %2 {
      %cst_21 = arith.constant 0.000000e+00 : f32
      %47 = vector.broadcast %cst_21 : f32 to vector<1x1xf32>
      %c0_22 = arith.constant 0 : index
      %c0_23 = arith.constant 0 : index
      %48 = vector.load %arg6[%c0_22, %c0_23] : memref<1x1xf32, #tpu.memory_space<vmem>>, vector<1x1xf32>
      tpu.vector_store %arg6[%c0_22, %c0_23], %47 {strides = array<i32>} : memref<1x1xf32, #tpu.memory_space<vmem>>, vector<1x1xf32>,
      %cst_24 = arith.constant 0.000000e+00 : f32
      %49 = vector.broadcast %cst_24 : f32 to vector<1x1xf32>
      %c0_25 = arith.constant 0 : index
      %c0_26 = arith.constant 0 : index
      %50 = vector.load %arg7[%c0_25, %c0_26] : memref<1x1xf32, #tpu.memory_space<vmem>>, vector<1x1xf32>
      tpu.vector_store %arg7[%c0_25, %c0_26], %49 {strides = array<i32>} : memref<1x1xf32, #tpu.memory_space<vmem>>, vector<1x1xf32>,
      %c0_27 = arith.constant 0 : index
      %c0_28 = arith.constant 0 : index
      %51 = vector.load %arg3[%c0_27, %c0_28] : memref<2x16xf32, #tpu.memory_space<vmem>>, vector<2x16xf32>
      %c0_29 = arith.constant 0 : index
      %c0_30 = arith.constant 0 : index
      %52 = vector.load %arg4[%c0_29, %c0_30] : memref<2x16xf32, #tpu.memory_space<vmem>>, vector<2x16xf32>
      %53 = math.absf %51 : vector<2x16xf32>
      %54 = math.log %53 : vector<2x16xf32>
      %cst_31 = arith.constant 2.000000e+00 : f32
      %55 = vector.broadcast %cst_31 : f32 to vector<2x16xf32>
      %56 = arith.mulf %55, %54 : vector<2x16xf32>
      %cst_32 = arith.constant 1.000000e+00 : f32
      %57 = vector.broadcast %cst_32 : f32 to vector<2x16xf32>
      %58 = arith.addf %57, %56 : vector<2x16xf32>
      %59 = arith.mulf %51, %51 : vector<2x16xf32>
      %60 = arith.subf %58, %59 : vector<2x16xf32>
      %61 = arith.mulf %52, %52 : vector<2x16xf32>
      %62 = arith.subf %60, %61 : vector<2x16xf32>
      %63 = vector.shape_cast %62 : vector<2x16xf32> to vector<1x2x16xf32>
      %cst_33 = arith.constant dense<0.000000e+00> : vector<1xf32>
      %64 = vector.multi_reduction <add>, %63, %cst_33 [1, 2] : vector<1x2x16xf32> to vector<1xf32>
      %65 = vector.shape_cast %64 : vector<1xf32> to vector<1x1x1xf32>
      %66 = vector.extract %65[0, 0, 0] : f32 from vector<1x1x1xf32>
      %67 = vector.broadcast %66 : f32 to vector<1x1xf32>
      %cst_34 = arith.constant -5.000000e-01 : f32
      %68 = vector.broadcast %cst_34 : f32 to vector<1x1xf32>
      %69 = arith.mulf %68, %67 : vector<1x1xf32>
      %c0_35 = arith.constant 0 : index
      %c0_36 = arith.constant 0 : index
      %70 = vector.load %arg8[%c0_35, %c0_36] : memref<1x1xf32, #tpu.memory_space<vmem>>, vector<1x1xf32>
      tpu.vector_store %arg8[%c0_35, %c0_36], %69 {strides = array<i32>} : memref<1x1xf32, #tpu.memory_space<vmem>>, vector<1x1xf32>,
    } else {
    }
    %c0 = arith.constant 0 : index
    %c0_1 = arith.constant 0 : index
    %3 = vector.load %arg1[%c0, %c0_1] : memref<32x32xf32, #tpu.memory_space<vmem>>, vector<32x32xf32>
    %c0_2 = arith.constant 0 : index
    %c0_3 = arith.constant 0 : index
    %4 = vector.load %arg2[%c0_2, %c0_3] : memref<32x1xi32, #tpu.memory_space<vmem>>, vector<32x1xi32>
    %cst = arith.constant dense<0xFF800000> : vector<32xf32>
    %5 = vector.multi_reduction <maximumf>, %3, %cst [1] : vector<32x32xf32> to vector<32xf32>
    %6 = vector.shape_cast %5 : vector<32xf32> to vector<32x1xf32>
    %7 = vector.broadcast %6 : vector<32x1xf32> to vector<32x32xf32>
    %8 = arith.subf %3, %7 : vector<32x32xf32>
    %9 = math.exp %8 : vector<32x32xf32>
    %cst_4 = arith.constant dense<0.000000e+00> : vector<32xf32>
    %10 = vector.multi_reduction <add>, %9, %cst_4 [1] : vector<32x32xf32> to vector<32xf32>
    %11 = vector.shape_cast %10 : vector<32xf32> to vector<32x1xf32>
    %12 = math.log %11 : vector<32x1xf32>
    %13 = arith.addf %6, %12 : vector<32x1xf32>
    %14 = tpu.iota {dimensions = array<i32: 1>} : vector<32x32xi32>
    %15 = vector.broadcast %4 : vector<32x1xi32> to vector<32x32xi32>
    %16 = arith.cmpi eq, %14, %15 : vector<32x32xi32>
    %cst_5 = arith.constant 0.000000e+00 : f32
    %17 = vector.broadcast %cst_5 : f32 to vector<32x32xf32>
    %18 = arith.select %16, %3, %17 : vector<32x32xi1>, vector<32x32xf32>
    %cst_6 = arith.constant dense<0.000000e+00> : vector<32xf32>
    %19 = vector.multi_reduction <add>, %18, %cst_6 [1] : vector<32x32xf32> to vector<32xf32>
    %20 = vector.shape_cast %19 : vector<32xf32> to vector<32x1xf32>
    %c0_i32_7 = arith.constant 0 : i32
    %21 = vector.broadcast %c0_i32_7 : i32 to vector<32x1xi32>
    %22 = arith.cmpi ne, %4, %21 : vector<32x1xi32>
    %23 = arith.subf %13, %20 : vector<32x1xf32>
    %cst_8 = arith.constant 0.000000e+00 : f32
    %24 = vector.broadcast %cst_8 : f32 to vector<32x1xf32>
    %25 = arith.select %22, %23, %24 : vector<32x1xi1>, vector<32x1xf32>
    %c0_9 = arith.constant 0 : index
    %c0_10 = arith.constant 0 : index
    %26 = vector.load %arg6[%c0_9, %c0_10] : memref<1x1xf32, #tpu.memory_space<vmem>>, vector<1x1xf32>
    %27 = vector.shape_cast %25 : vector<32x1xf32> to vector<1x32x1xf32>
    %cst_11 = arith.constant dense<0.000000e+00> : vector<1xf32>
    %28 = vector.multi_reduction <add>, %27, %cst_11 [1, 2] : vector<1x32x1xf32> to vector<1xf32>
    %29 = vector.shape_cast %28 : vector<1xf32> to vector<1x1x1xf32>
    %30 = vector.extract %29[0, 0, 0] : f32 from vector<1x1x1xf32>
    %31 = vector.broadcast %30 : f32 to vector<1x1xf32>
    %32 = arith.addf %26, %31 : vector<1x1xf32>
    %c0_12 = arith.constant 0 : index
    %c0_13 = arith.constant 0 : index
    %33 = vector.load %arg6[%c0_12, %c0_13] : memref<1x1xf32, #tpu.memory_space<vmem>>, vector<1x1xf32>
    tpu.vector_store %arg6[%c0_12, %c0_13], %32 {strides = array<i32>} : memref<1x1xf32, #tpu.memory_space<vmem>>, vector<1x1xf32>,
    %c0_14 = arith.constant 0 : index
    %c0_15 = arith.constant 0 : index
    %34 = vector.load %arg7[%c0_14, %c0_15] : memref<1x1xf32, #tpu.memory_space<vmem>>, vector<1x1xf32>
    %35 = arith.extui %22 : vector<32x1xi1> to vector<32x1xi32>
    %36 = arith.sitofp %35 : vector<32x1xi32> to vector<32x1xf32>
    %37 = vector.shape_cast %36 : vector<32x1xf32> to vector<1x32x1xf32>
    %cst_16 = arith.constant dense<0.000000e+00> : vector<1xf32>
    %38 = vector.multi_reduction <add>, %37, %cst_16 [1, 2] : vector<1x32x1xf32> to vector<1xf32>
    %39 = vector.shape_cast %38 : vector<1xf32> to vector<1x1x1xf32>
    %40 = vector.extract %39[0, 0, 0] : f32 from vector<1x1x1xf32>
    %41 = vector.broadcast %40 : f32 to vector<1x1xf32>
    %42 = arith.addf %34, %41 : vector<1x1xf32>
    %c0_17 = arith.constant 0 : index
    %c0_18 = arith.constant 0 : index
    %43 = vector.load %arg7[%c0_17, %c0_18] : memref<1x1xf32, #tpu.memory_space<vmem>>, vector<1x1xf32>
    tpu.vector_store %arg7[%c0_17, %c0_18], %42 {strides = array<i32>} : memref<1x1xf32, #tpu.memory_space<vmem>>, vector<1x1xf32>,
    %c0_i32_19 = arith.constant 0 : i32
    %44 = arith.cmpi eq, %arg0, %c0_i32_19 : i32
    %45 = arith.extui %44 : i1 to i32
    %c0_i32_20 = arith.constant 0 : i32
    %46 = arith.cmpi ne, %45, %c0_i32_20 : i32
    scf.if %46 {
      %c0_21 = arith.constant 0 : index
      %c0_22 = arith.constant 0 : index
      %47 = vector.load %arg7[%c0_21, %c0_22] : memref<1x1xf32, #tpu.memory_space<vmem>>, vector<1x1xf32>
      %cst_23 = arith.constant 1.000000e+00 : f32
      %48 = vector.broadcast %cst_23 : f32 to vector<1x1xf32>
      %49 = arith.maximumf %47, %48 : vector<1x1xf32>
      %c0_24 = arith.constant 0 : index
      %c0_25 = arith.constant 0 : index
      %50 = vector.load %arg6[%c0_24, %c0_25] : memref<1x1xf32, #tpu.memory_space<vmem>>, vector<1x1xf32>
      %51 = arith.divf %50, %49 : vector<1x1xf32>
      %c0_26 = arith.constant 0 : index
      %c0_27 = arith.constant 0 : index
      %52 = vector.load %arg8[%c0_26, %c0_27] : memref<1x1xf32, #tpu.memory_space<vmem>>, vector<1x1xf32>
      %cst_28 = arith.constant 1.250000e-01 : f32
      %53 = vector.broadcast %cst_28 : f32 to vector<1x1xf32>
      %54 = arith.mulf %52, %53 : vector<1x1xf32>
      %55 = arith.addf %54, %51 : vector<1x1xf32>
      %c0_29 = arith.constant 0 : index
      %c0_30 = arith.constant 0 : index
      %56 = vector.load %arg5[%c0_29, %c0_30] : memref<1x1xf32, #tpu.memory_space<vmem>>, vector<1x1xf32>
      tpu.vector_store %arg5[%c0_29, %c0_30], %55 {strides = array<i32>} : memref<1x1xf32, #tpu.memory_space<vmem>>, vector<1x1xf32>,
    } else {
    }
    return
  }
  func.func @transform_0(%arg0: i32) -> (i32, i32) {
    %c0_i32 = arith.constant 0 : i32
    %c0_i32_0 = arith.constant 0 : i32
    return %arg0, %c0_i32 : i32, i32
  }
  func.func @transform_1(%arg0: i32) -> (i32, i32) {
    %c0_i32 = arith.constant 0 : i32
    %c0_i32_0 = arith.constant 0 : i32
    return %arg0, %c0_i32 : i32, i32
  }
  func.func @transform_2(%arg0: i32) -> (i32, i32) {
    %c0_i32 = arith.constant 0 : i32
    %c0_i32_0 = arith.constant 0 : i32
    %c0_i32_1 = arith.constant 0 : i32
    return %c0_i32, %c0_i32_0 : i32, i32
  }
  func.func @transform_3(%arg0: i32) -> (i32, i32) {
    %c0_i32 = arith.constant 0 : i32
    %c0_i32_0 = arith.constant 0 : i32
    %c0_i32_1 = arith.constant 0 : i32
    return %c0_i32, %c0_i32_0 : i32, i32
  }
  func.func @transform_4(%arg0: i32) -> (i32, i32) {
    %c0_i32 = arith.constant 0 : i32
    %c0_i32_0 = arith.constant 0 : i32
    %c0_i32_1 = arith.constant 0 : i32
    return %c0_i32, %c0_i32_0 : i32, i32
  }
}

</mosaic_0001>

<bundles_post_ra>
// kernel: tpu_custom_call.1
= control target key start
LH: loop header
LB: loop body
LE: loop exit
PB: predicated region body
PF: predicated region fallthrough
CT: control target
= control target key end

     0   :  { %vm58_vm0 = vcmask 261120   ;;  %v288_v6 = vmov 0   ;;  %s448_s0 = inlined_call_operand.vmem [shape: f32[32,32], index: 0, kind: input, shape index: {}]   ;;  %s449_s1 = inlined_call_operand.vmem [shape: s32[32,1], index: 1, kind: input, shape index: {}]   ;;  %s450_s2 = inlined_call_operand.vmem [shape: f32[2,16], index: 2, kind: input, shape index: {}]   ;;  %s451_s3 = inlined_call_operand.vmem [shape: f32[2,16], index: 3, kind: input, shape index: {}]   ;;  %s452_s4 = inlined_call_operand.hbm [shape: f32[1,1], index: 4, kind: output, shape index: {}]  }
   0x1   :  { %v50_v0 = vld [vmem:[%s448_s0] sm:$0xff]  ;;  %v52_v1 = vld [vmem:[%s448_s0 + $0x10] sm:$0xff]  ;;  %v325_v2 = vld [vmem:[%s448_s0 + $0x8] sm:$0xff]  ;;  %243 = vset.pattern.permute.xlu1 %v288_v6  ;;  %242 = vset.pattern.permute.xlu0 %v288_v6 }
   0x2   :  { %v59_v3 = vsel %vm58_vm0, %v50_v0, -inf  ;;  %v65_v4 = vsel %vm58_vm0, %v52_v1, -inf  ;;  %v332_v5 = vld [vmem:[%s448_s0 + $0x18] sm:$0xff]  ;;  %v62_v7 = vsel %vm58_vm0, %v325_v2, -inf }
   0x3   :  { %60 = vmax.xlane.f32.xlu0 %v59_v3  ;;  %66 = vmax.xlane.f32.xlu1 %v65_v4  ;;  %v68_v8 = vsel %vm58_vm0, %v332_v5, -inf }
   0x4   :  { %9 = vsyncpa [#allocation6], 0  ;;  %v341_v9 = vld [vmem:[%s449_s1 + $0x8] sm:$0xff]  ;;  %v347_v10 = vld [vmem:[%s449_s1 + $0x10] sm:$0xff]  ;;  %v107_v26 = vlaneseq  ;;  %vm154_vm7 = vcmask 7168   ;;  %v289_v52 = vmov 0.0  }
   0x5   :  { %v352_v11 = vld [vmem:[%s449_s1] sm:$0xff]  ;;  %v359_v12 = vld [vmem:[%s449_s1 + $0x18] sm:$0xff]  ;;  %vm142_vm5 = vcmp.ne.s32.totalorder %v341_v9, 0  ;;  %vm143_vm8 = vcmp.ne.s32.totalorder %v347_v10, 0  ;;  %vm36_vm10 = vcmask 123904   ;;  %vm22_vm11 = vcmask 0  }
   0x6   :  { %v108_v27 = vand.u32 127, %v107_v26  ;;  %v25_v42 = vld [vmem:[%s450_s2] sm:$0x3]  ;;  %vm141_vm6 = vcmp.ne.s32.totalorder %v352_v11, 0  ;;  %v230_v53 = vsel %vm142_vm5, 1.0, %v289_v52  ;;  %v231_v62 = vsel %vm143_vm8, 1.0, %v289_v52 }
   0x7   :  { %63 = vmax.xlane.f32.xlu0 %v62_v7  ;;  %69 = vmax.xlane.f32.xlu1 %v68_v8  ;;  %v27_v45 = vand.u32 2147483647, %v25_v42  ;;  %v229_v54 = vsel %vm141_vm6, 1.0, %v289_v52  ;;  %v32_v56 = vmul.f32 %v25_v42, %v25_v42  ;;  %v26_v57 = vld [vmem:[%s451_s3] sm:$0x3]  ;;  %v185_v58 = vsel %vm154_vm7, %v230_v53, 0.0 }
   0x8   :  { %v184_v59 = vsel %vm154_vm7, %v229_v54, 0.0  ;;  %v34_v61 = vmul.f32 %v26_v57, %v26_v57  ;;  %vm144_vm9 = vcmp.ne.s32.totalorder %v359_v12, 0  ;;  %23 = vst.msk [vmem:[#allocation2] sm:$0x1] %vm22_vm11, %v289_v52  ;;  %24 = vst.msk [vmem:[#allocation3] sm:$0x1] %vm22_vm11, %v289_v52 }
   0x9   :  { %v232_v3 = vsel %vm144_vm9, 1.0, %v289_v52  ;;  %s290_s8 = smov [#allocation5]  }
   0xa   :  { %s221_s9 = sshll.u32 %s290_s8, 4  ;;  %s222_s9 = int_to_ptr.vmem [resolvable:$true] %s221_s9 }
   0xb   :  { %s264_s10 = scalar_lea.vmem %s222_s9, 16  ;;  %s268_s11 = scalar_lea.vmem %s222_s9, 32 }
   0xc   :  { %p265_p0 = scmp.ne.s32.totalorder %s222_s9, %s264_s10  ;;  %p269_p1 = scmp.lt.s32.totalorder %s222_s9, %s222_s9 }
   0xd   :  { %p270_p2 = scmp.lt.s32.totalorder %s268_s11, %s264_s10 }
   0xf   :  { %v153_v52 = vld [vmem:[#allocation2] sm:$0x1]  ;;  %p271_p3 = por %p270_p2, %p269_p1 }
  0x11   :  { %p272_p4 = pnand %p271_p3, %p265_p0 }
  0x18   :  { %113 = vperm.xlu1 %243, %v341_v9  }
  0x1c   :  { %116 = vperm.xlu1 %243, %v347_v10  }
  0x1d   :  { %110 = vperm.xlu0 %242, %v352_v11  }
  0x20   :  { %119 = vperm.xlu1 %243, %v359_v12  }
  0x90   :  { %v362_v13 = vpop.xlane.xlu0 %60  ;;  %v364_v14 = vpop.xlane.xlu1 %66 }
  0x91   :  { %v71_v15 = vsub.f32 %v50_v0, %v362_v13  ;;  %v73_v16 = vsub.f32 %v52_v1, %v364_v14 }
  0x93   :  { %v75_v17 = vmul.f32 1.442695, %v71_v15  ;;  %v79_v18 = vmul.f32 1.442695, %v73_v16 }
  0x94   :  { %v368_v19 = vpop.xlane.xlu0 %63  ;;  %v370_v20 = vpop.xlane.xlu1 %69 }
  0x95   :  { %244 = vpow2.f32 %v75_v17  ;;  %v72_v21 = vsub.f32 %v325_v2, %v368_v19  ;;  %v74_v22 = vsub.f32 %v332_v5, %v370_v20 }
  0x96   :  { %246 = vpow2.f32 %v79_v18 }
  0x97   :  { %v77_v23 = vmul.f32 1.442695, %v72_v21  ;;  %v81_v24 = vmul.f32 1.442695, %v74_v22 }
  0x98   :  { %v114_v25 = vpop.permute.xlu1 %113 }
  0x99   :  { %248 = vpow2.f32 %v77_v23  ;;  %vm122_vm3 = vcmp.eq.s32.totalorder %v108_v27, %v114_v25 }
  0x9a   :  { %250 = vpow2.f32 %v81_v24  ;;  %v126_v44 = vsel %vm122_vm3, %v325_v2, 0.0  ;;  %v187_v2 = vsel %vm154_vm7, %v231_v62, 0.0 }
  0x9b   :  { %252 = vlog2.f32 %v27_v45  ;;  %v132_v46 = vsel %vm58_vm0, %v126_v44, 0.0 }
  0x9c   :  { %v117_v29 = vpop.permute.xlu1 %116  ;;  %v111_v32 = vpop.permute.xlu0 %110 }
  0x9d   :  { %vm123_vm1 = vcmp.eq.s32.totalorder %v108_v27, %v117_v29  ;;  %vm121_vm2 = vcmp.eq.s32.totalorder %v108_v27, %v111_v32 }
  0x9e   :  { %v127_v35 = vsel %vm123_vm1, %v52_v1, 0.0  ;;  %v125_v40 = vsel %vm121_vm2, %v50_v0, 0.0  ;;  %v186_v0 = vadd.f32 %v185_v58, %v184_v59 }
  0x9f   :  { %v245_v28 = vpop.eup %244  ;;  %v135_v39 = vsel %vm58_vm0, %v127_v35, 0.0  ;;  %v129_v41 = vsel %vm58_vm0, %v125_v40, 0.0 }
  0xa0   :  { %v247_v30 = vpop.eup %246  ;;  %v83_v31 = vsel %vm58_vm0, %v245_v28, 0.0  ;;  %v120_v43 = vpop.permute.xlu1 %119  ;;  %v188_v4 = vadd.f32 %v187_v2, %v186_v0  ;;  %v175_v2 = vld [vmem:[#allocation3] sm:$0x1] }
  0xa1   :  { %84 = vadd.xlane.f32.xlu1 %v83_v31  ;;  %v89_v33 = vsel %vm58_vm0, %v247_v30, 0.0  ;;  %vm124_vm4 = vcmp.eq.s32.totalorder %v108_v27, %v120_v43 }
  0xa2   :  { %v128_v47 = vsel %vm124_vm4, %v332_v5, 0.0  ;;  %v189_v5 = vsel %vm154_vm7, %v232_v3, 0.0 }
  0xa3   :  { %v249_v34 = vpop.eup %248  ;;  %v138_v48 = vsel %vm58_vm0, %v128_v47, 0.0  ;;  %v190_v6 = vadd.f32 %v189_v5, %v188_v4 }
  0xa4   :  { %v251_v36 = vpop.eup %250  ;;  %v86_v37 = vsel %vm58_vm0, %v249_v34, 0.0 }
  0xa5   :  { %90 = vadd.xlane.f32.xlu1 %v89_v33  ;;  %87 = vadd.xlane.f32.xlu0 %v86_v37  ;;  %v92_v38 = vsel %vm58_vm0, %v251_v36, 0.0  ;;  %v253_v49 = vpop.eup %252 }
  0xa6   :  { %v29_v50 = vmul.f32 0.6931472, %v253_v49 }
  0xa8   :  { %v30_v51 = vmul.f32 2.0, %v29_v50 }
  0xa9   :  { %93 = vadd.xlane.f32.xlu1 %v92_v38  ;;  %136 = vadd.xlane.f32.xlu0 %v135_v39 }
  0xaa   :  { %v31_v55 = vadd.f32 1.0, %v30_v51 }
  0xac   :  { %v33_v60 = vsub.f32 %v31_v55, %v32_v56 }
  0xad   :  { %130 = vadd.xlane.f32.xlu1 %v129_v41 }
  0xae   :  { %v35_v63 = vsub.f32 %v33_v60, %v34_v61 }
  0xb0   :  { %v37_v1 = vsel %vm36_vm10, %v35_v63, 0.0 }
  0xb1   :  { %133 = vadd.xlane.f32.xlu1 %v132_v46  ;;  %38 = vadd.xlane.f32.xlu0 %v37_v1 }
  0xb5   :  { %139 = vadd.xlane.f32.xlu1 %v138_v48  ;;  %191 = vadd.xlane.f32.xlu0 %v190_v6 }
 0x12e   :  { %v85_v7 = vpop.xlane.xlu1 %84 }
 0x12f   :  { %254 = vlog2.f32 %v85_v7 }
 0x132   :  { %v91_v8 = vpop.xlane.xlu1 %90  ;;  %v88_v15 = vpop.xlane.xlu0 %87 }
 0x133   :  { %256 = vlog2.f32 %v91_v8 }
 0x134   :  { %258 = vlog2.f32 %v88_v15 }
 0x136   :  { %v94_v16 = vpop.xlane.xlu1 %93  ;;  %v137_v31 = vpop.xlane.xlu0 %136 }
 0x137   :  { %260 = vlog2.f32 %v94_v16 }
 0x139   :  { %v255_v17 = vpop.eup %254 }
 0x13a   :  { %v96_v18 = vmul.f32 0.6931472, %v255_v17  ;;  %v131_v21 = vpop.xlane.xlu1 %130 }
 0x13c   :  { %v103_v22 = vadd.f32 %v96_v18, %v362_v13 }
 0x13d   :  { %v257_v23 = vpop.eup %256 }
 0x13e   :  { %v259_v24 = vpop.eup %258  ;;  %v100_v25 = vmul.f32 0.6931472, %v257_v23  ;;  %v145_v27 = vsub.f32 %v103_v22, %v131_v21  ;;  %v134_v28 = vpop.xlane.xlu1 %133 }
 0x13f   :  { %v98_v26 = vmul.f32 0.6931472, %v259_v24  ;;  %v39_v44 = vpop.xlane.xlu0 %38 }
 0x140   :  { %v105_v29 = vadd.f32 %v100_v25, %v364_v14  ;;  %v149_v35 = vsel %vm141_vm6, %v145_v27, 0.0  ;;  %v40_v9 = vrot.slane %v39_v44, 4 }
 0x141   :  { %v261_v30 = vpop.eup %260  ;;  %v104_v32 = vadd.f32 %v98_v26, %v368_v19  ;;  %v155_v14 = vsel %vm154_vm7, %v149_v35, 0.0 }
 0x142   :  { %v102_v33 = vmul.f32 0.6931472, %v261_v30  ;;  %v147_v34 = vsub.f32 %v105_v29, %v137_v31  ;;  %v140_v39 = vpop.xlane.xlu1 %139  ;;  %v41_v45 = vadd.f32 %v40_v9, %v39_v44 }
 0x143   :  { %v146_v36 = vsub.f32 %v104_v32, %v134_v28  ;;  %v192_v51 = vpop.xlane.xlu0 %191 }
 0x144   :  { %v106_v13 = vadd.f32 %v102_v33, %v370_v20  ;;  %v151_v37 = vsel %vm143_vm8, %v147_v34, 0.0  ;;  %v42_v46 = vrot.slane %v41_v45, 2  ;;  %v193_v53 = vrot.slane %v192_v51, 4 }
 0x145   :  { %v150_v38 = vsel %vm142_vm5, %v146_v36, 0.0  ;;  %v158_v42 = vsel %vm154_vm7, %v151_v37, 0.0 }
 0x146   :  { %v156_v40 = vsel %vm154_vm7, %v150_v38, 0.0  ;;  %v148_v19 = vsub.f32 %v106_v13, %v140_v39  ;;  %v43_v47 = vadd.f32 %v42_v46, %v41_v45  ;;  %v194_v54 = vadd.f32 %v193_v53, %v192_v51 }
 0x147   :  { %v157_v41 = vadd.f32 %v156_v40, %v155_v14 }
 0x148   :  { %v152_v11 = vsel %vm144_vm9, %v148_v19, 0.0  ;;  %v44_v48 = vrot.slane %v43_v47, 1  ;;  %v195_v55 = vrot.slane %v194_v54, 2 }
 0x149   :  { %v159_v43 = vadd.f32 %v158_v42, %v157_v41  ;;  %v160_v20 = vsel %vm154_vm7, %v152_v11, 0.0 }
 0x14a   :  { %v45_v49 = vadd.f32 %v44_v48, %v43_v47  ;;  %v196_v59 = vadd.f32 %v195_v55, %v194_v54 }
 0x14b   :  { %v161_v10 = vadd.f32 %v160_v20, %v159_v43 }
 0x14c   :  { %233 = vpush %v45_v49  ;;  %v197_v62 = vrot.slane %v196_v59, 1 }
 0x14d   :  { %162 = vadd.xlane.f32.xlu1 %v161_v10 }
 0x14e   :  { %v198_v1 = vadd.f32 %v197_v62, %v196_v59 }
 0x17d   :  { %s234_s3 = spop %233 }
 0x17e   :  { %v47_v12 = vstv %s234_s3 }
 0x17f   :  { %v48_v50 = vmul.f32 -0.5, %v47_v12 }
 0x181   :  { %49 = vst.msk [vmem:[#allocation4] sm:$0x1] %vm22_vm11, %v48_v50 }
 0x188   :  { %v211_v15 = vld [vmem:[#allocation4] sm:$0x1] }
 0x189   :  { %v212_v21 = vmul.f32 0.125, %v211_v15 }
 0x1da   :  { %v163_v56 = vpop.xlane.xlu1 %162 }
 0x1db   :  { %v164_v57 = vrot.slane %v163_v56, 4 }
 0x1dd   :  { %v165_v58 = vadd.f32 %v164_v57, %v163_v56 }
 0x1df   :  { %v166_v60 = vrot.slane %v165_v58, 2 }
 0x1e1   :  { %v167_v61 = vadd.f32 %v166_v60, %v165_v58 }
 0x1e3   :  { %v168_v63 = vrot.slane %v167_v61, 1 }
 0x1e5   :  { %v169_v0 = vadd.f32 %v168_v63, %v167_v61 }
 0x1e7   :  { %235 = vpush %v169_v0 }
 0x1e8   :  { %237 = vpush %v198_v1 }
 0x218   :  { %s236_s6 = spop %235 }
 0x219   :  { %v171_v3 = vstv %s236_s6  ;;  %s238_s7 = spop %237 }
 0x21a   :  { %v172_v4 = vadd.f32 %v171_v3, %v153_v52  ;;  %v200_v5 = vstv %s238_s7 }
 0x21b   :  { %v201_v6 = vadd.f32 %v200_v5, %v175_v2 }
 0x21c   :  { %174 = vst.msk [vmem:[#allocation2] sm:$0x1] %vm22_vm11, %v172_v4 }
 0x21d   :  { %202 = vst.msk [vmem:[#allocation3] sm:$0x1] %vm22_vm11, %v201_v6 }
 0x223   :  { %v208_v17 = vld [vmem:[#allocation2] sm:$0x1] }
 0x224   :  { %v206_v7 = vld [vmem:[#allocation3] sm:$0x1] }
 0x225   :  { %v207_v8 = vmax.f32 %v206_v7, 1.0 }
 0x227   :  { %262 = vrcp.f32 %v207_v8 }
 0x231   :  { %v263_v16 = vpop.eup %262 }
 0x232   :  { %v210_v18 = vmul.f32 %v263_v16, %v208_v17 }
 0x234   :  { %v213_v22 = vadd.f32 %v212_v21, %v210_v18 }
 0x236   :  { %214 = vst.msk [vmem:[#allocation5] sm:$0x1] %vm22_vm11, %v213_v22 }
 0x237   :  { %275 = shalt.err (!%p272_p4)
}
 0x238   :  { %s276_s14 = scalar_lea.hbm %s452_s4, 16 }
 0x239   :  { %p277_p5 = scmp.ne.s32.totalorder %s452_s4, %s276_s14  ;;  %p280_p6 = scmp.lt.u32.totalorder %s276_s14, %s452_s4 }
 0x23b   :  { %p282_p7 = pnand %p280_p6, %p277_p5 }
 0x23d   :  { %285 = shalt.err (!%p282_p7)
}
 0x23e   :  { %224 = dma.vmem_to_hbm [thread:$0]  %s222_s9, 16, %s452_s4, [#allocation6]  }
 0x23f   :  { %286 = dma.done.wait [#allocation6], 16  }
 0x240   :  { %287 = vsyncadd [#allocation6], 4294967280 }
 0x241   :  { %228 = vsyncpa [#allocation6], 1 }

</bundles_post_ra>
